<compile_context>
chip_gen: v7x
topology: tpu7x:2x2x1
jax: 0.10.0
libtpu: 0.0.40
codegen_flags: <defaults>
</compile_context>

<pallas_src>
import jax
import jax.numpy as jnp
from jax.experimental import pallas as pl
from jax.experimental.pallas import tpu as pltpu


_LANE = 128
_MAX_BATCH_TILE = 1024                 # rows per block (multiple of sublane granule)
_MAX_BLOCK_BYTES = 4 * 1024 * 1024     # per-block cap: 2 streams x 2 buffers ~ 16 MiB
_MIN_BLOCK_BYTES = 1 * 1024 * 1024     # floor so per-step (~0.35 us) overhead is negligible
_TARGET_STEPS = 8                      # aim for >= 8 grid steps on large inputs
_VMEM_LIMIT_BYTES = 32 * 1024 * 1024
_SUBLANE = {1: 32, 2: 16, 4: 8, 8: 8}  # sublane granule by itemsize


def _scale_kernel(wav_ref, scales_ref, out_ref):
    # wav_ref:    (batch_tile, time_tile)  -- time on the lane axis
    # scales_ref: (batch_tile, 1) float32  -- broadcast over the lane axis
    wav = wav_ref[...]
    out_ref[...] = (wav.astype(jnp.float32) * scales_ref[...]).astype(out_ref.dtype)


def _round_up(x, m):
    return (x + m - 1) // m * m


def _choose_tiles(batch, time, itemsize):
    """Pick (batch_tile, time_tile).

    Each block dim is either lane/sublane aligned or equal to the full array
    dim, the block stays under _MAX_BLOCK_BYTES, and for large inputs the grid
    has >= _TARGET_STEPS steps so the read/write pipeline stays busy."""
    sub = _SUBLANE.get(itemsize, 8)

    # Batch tile: whole batch up to _MAX_BATCH_TILE rows, else fixed-size tiles
    # (multiple of the sublane granule); ragged last block is masked by Pallas.
    if batch <= _MAX_BATCH_TILE:
        batch_tile = batch
    else:
        batch_tile = (_MAX_BATCH_TILE // sub) * sub

    if time <= _LANE:
        return batch_tile, time            # short time axis: full (legal) block

    row_bytes = batch_tile * itemsize
    max_tile = max(_LANE, (_MAX_BLOCK_BYTES // row_bytes) // _LANE * _LANE)
    min_tile = max(_LANE, (_MIN_BLOCK_BYTES // row_bytes) // _LANE * _LANE)

    batch_blocks = pl.cdiv(batch, batch_tile)
    want_time_blocks = max(1, pl.cdiv(_TARGET_STEPS, batch_blocks))
    tile_for_steps = _round_up(pl.cdiv(time, want_time_blocks), _LANE)

    time_tile = min(max_tile, max(min_tile, tile_for_steps))
    if time_tile >= time:
        time_tile = time                   # single time block: exact extent
    return batch_tile, time_tile


def _scale_pallas(wav, scales):
    batch, time = wav.shape
    batch_tile, time_tile = _choose_tiles(batch, time, wav.dtype.itemsize)
    grid = (pl.cdiv(batch, batch_tile), pl.cdiv(time, time_tile))

    return pl.pallas_call(
        _scale_kernel,
        out_shape=jax.ShapeDtypeStruct((batch, time), wav.dtype),
        grid_spec=pltpu.PrefetchScalarGridSpec(
            num_scalar_prefetch=0,
            grid=grid,
            in_specs=[
                pl.BlockSpec((batch_tile, time_tile), lambda b, t: (b, t)),
                pl.BlockSpec((batch_tile, 1), lambda b, t: (b, 0)),
            ],
            out_specs=pl.BlockSpec((batch_tile, time_tile), lambda b, t: (b, t)),
        ),
        compiler_params=pltpu.CompilerParams(
            dimension_semantics=("parallel", "parallel"),
            vmem_limit_bytes=_VMEM_LIMIT_BYTES,
        ),
    )(wav, scales)


def _fold_factor(batch, time, itemsize):
    """Rows-per-batch-row fold factor for tiny batches so sublanes are dense.
    Requires time % r == 0 (pure minor-dim split) and time // r >= 128 so the
    lane axis stays dense.  Returns 1 when no fold applies."""
    sub = _SUBLANE.get(itemsize, 8)
    if batch >= sub or time < 2 * _LANE:
        return 1
    needed = pl.cdiv(sub, batch)
    fallback = 1
    for r in range(needed, min(needed * 16, time // _LANE) + 1):
        if time % r == 0 and (time // r) >= _LANE:
            if (batch * r) % sub == 0:
                return r
            if fallback == 1:
                fallback = r
    return fallback


def scale_forward(wav, key, proba=1.0, min_=0.25, max_=1.25):
    """Scale augmentation. `key` drives both the Bernoulli apply decision and
    the per-row uniform scales (deterministic given the key)."""
    batch, time = wav.shape
    if proba <= 0.0:                       # statically never applied
        return wav

    k_apply, k_scales = jax.random.split(key)
    scales = jax.random.uniform(k_scales, (batch, 1), dtype=jnp.float32,
                                minval=min_, maxval=max_)
    if proba < 1.0:
        apply = jax.random.uniform(k_apply, ()) < proba
        # Fold the Bernoulli into the scales (identity multiply when not
        # applied): always exactly one read + one write of wav, no lax.cond
        # identity-branch copy.
        scales = jnp.where(apply, scales, jnp.ones_like(scales))

    r = _fold_factor(batch, time, wav.dtype.itemsize)
    if r > 1:
        out = _scale_pallas(wav.reshape(batch * r, time // r),
                            jnp.repeat(scales, r, axis=0))
        return out.reshape(batch, time)
    return _scale_pallas(wav, scales)


if __name__ == "__main__":
    root = jax.random.PRNGKey(0)
    k_wav, k_aug, k_wav2, k_aug2 = jax.random.split(root, 4)

    # Main path: batch >= 8, ragged time (not a multiple of 128) exercises the
    # cdiv grid with a masked tail block (no pad/slice copies).
    batch, time = 8, 1000
    wav = jax.random.normal(k_wav, (batch, time), dtype=jnp.float32)
    out = jax.block_until_ready(scale_forward(wav, k_aug, proba=1.0))

    # Plain-JAX reference (same key splits -> same randoms).
    k_apply, k_scales = jax.random.split(k_aug)
    scales_ref = jax.random.uniform(k_scales, (batch, 1), dtype=jnp.float32,
                                    minval=0.25, maxval=1.25)
    ref = wav * scales_ref
    assert out.shape == wav.shape and out.dtype == wav.dtype
    assert jnp.allclose(out, ref, atol=1e-6, rtol=1e-6)

    # proba < 1 path (Bernoulli folded into the scales): scaled or identity.
    out2 = jax.block_until_ready(scale_forward(wav, k_aug, proba=0.5))
    assert out2.shape == wav.shape
    assert (jnp.allclose(out2, ref, atol=1e-6, rtol=1e-6)
            or jnp.allclose(out2, wav, atol=1e-6, rtol=1e-6))

    # Tiny-batch path: sublane folding ((2, 512) view -> dense (8, 128) block).
    batch2, time2 = 2, 512
    wav2 = jax.random.normal(k_wav2, (batch2, time2), dtype=jnp.float32)
    out3 = jax.block_until_ready(scale_forward(wav2, k_aug2, proba=1.0))
    _, k_scales2 = jax.random.split(k_aug2)
    scales_ref2 = jax.random.uniform(k_scales2, (batch2, 1), dtype=jnp.float32,
                                     minval=0.25, maxval=1.25)
    assert jnp.allclose(out3, wav2 * scales_ref2, atol=1e-6, rtol=1e-6)

    print("KERNEL_OK")
</pallas_src>

<mosaic_0001>
module attributes {stable_mosaic.version = 11 : i64} {
  func.func @_scale_kernel(%arg0: i32, %arg1: i32, %arg2: memref<8x1000xf32, #tpu.memory_space<vmem>>, %arg3: memref<8x1xf32, #tpu.memory_space<vmem>>, %arg4: memref<8x1000xf32, #tpu.memory_space<vmem>>) attributes {dimension_semantics = [#tpu.dimension_semantics<parallel>, #tpu.dimension_semantics<parallel>], iteration_bounds = array<i64: 1, 1>, scalar_prefetch = 0 : i64, scratch_operands = 0 : i64, tpu.core_type = #tpu.core_type<tc>, window_params = [{transform_indices = @transform_0, window_bounds = array<i64: 8, 1000>}, {transform_indices = @transform_1, window_bounds = array<i64: 8, 1>}, {transform_indices = @transform_2, window_bounds = array<i64: 8, 1000>}]} {
    %c0 = arith.constant 0 : index
    %c0_0 = arith.constant 0 : index
    %0 = vector.load %arg2[%c0, %c0_0] : memref<8x1000xf32, #tpu.memory_space<vmem>>, vector<8x1000xf32>
    %c0_1 = arith.constant 0 : index
    %c0_2 = arith.constant 0 : index
    %1 = vector.load %arg3[%c0_1, %c0_2] : memref<8x1xf32, #tpu.memory_space<vmem>>, vector<8x1xf32>
    %2 = vector.broadcast %1 : vector<8x1xf32> to vector<8x1000xf32>
    %3 = arith.mulf %0, %2 : vector<8x1000xf32>
    %c0_3 = arith.constant 0 : index
    %c0_4 = arith.constant 0 : index
    %4 = vector.load %arg4[%c0_3, %c0_4] : memref<8x1000xf32, #tpu.memory_space<vmem>>, vector<8x1000xf32>
    tpu.vector_store %arg4[%c0_3, %c0_4], %3 {strides = array<i32>} : memref<8x1000xf32, #tpu.memory_space<vmem>>, vector<8x1000xf32>,
    return
  }
  func.func @transform_0(%arg0: i32, %arg1: i32) -> (i32, i32) {
    %c0_i32 = arith.constant 0 : i32
    return %arg0, %arg1 : i32, i32
  }
  func.func @transform_1(%arg0: i32, %arg1: i32) -> (i32, i32) {
    %c0_i32 = arith.constant 0 : i32
    %c0_i32_0 = arith.constant 0 : i32
    return %arg0, %c0_i32 : i32, i32
  }
  func.func @transform_2(%arg0: i32, %arg1: i32) -> (i32, i32) {
    %c0_i32 = arith.constant 0 : i32
    return %arg0, %arg1 : i32, i32
  }
}

</mosaic_0001>

<bundles_post_ra>
// kernel: tpu_custom_call.1
= control target key start
LH: loop header
LB: loop body
LE: loop exit
PB: predicated region body
PF: predicated region fallthrough
CT: control target
= control target key end

     0   :  { %7 = vsyncpa [#allocation3], 0  ;;  %s168_s0 = inlined_call_operand.hbm [shape: f32[8,1000], index: 0, kind: input, shape index: {}]   ;;  %s169_s1 = inlined_call_operand.vmem [shape: f32[8,1], index: 1, kind: input, shape index: {}]   ;;  %s170_s2 = inlined_call_operand.hbm [shape: f32[8,1000], index: 2, kind: output, shape index: {}]  }
   0x1   :  { %8 = vsyncpa [#allocation4], 0  ;;  %s122_s9 = smov [#allocation2]   ;;  %s74_s13 = scalar_lea.hbm %s168_s0, 1024 }
   0x2   :  { %s15_s10 = sshll.u32 %s122_s9, 4  ;;  %p75_p0 = scmp.ne.s32.totalorder %s168_s0, %s74_s13  ;;  %s16_s10 = int_to_ptr.vmem [resolvable:$true] %s15_s10 }
   0x3   :  { %p78_p1 = scmp.lt.u32.totalorder %s74_s13, %s168_s0 }
   0x5   :  { %p80_p2 = pnand %p78_p1, %p75_p0 }
   0x7   :  { %83 = shalt.err (!%p80_p2)
}
   0x8   :  { %s84_s18 = scalar_lea.vmem %s16_s10, 1024  ;;  %p89_p4 = scmp.lt.s32.totalorder %s16_s10, %s16_s10 }
   0x9   :  { %p85_p3 = scmp.ne.s32.totalorder %s16_s10, %s84_s18  ;;  %p90_p5 = scmp.lt.s32.totalorder %s84_s18, %s84_s18 }
   0xb   :  { %p91_p6 = por %p90_p5, %p89_p4 }
   0xd   :  { %p92_p7 = pnand %p91_p6, %p85_p3 }
   0xf   :  { %95 = shalt.err (!%p92_p7)
}
  0x10   :  { %18 = dma.hbm_to_vmem [thread:$0]  %s168_s0, 1024, %s16_s10, [#allocation3]  }
  0x11   :  { %118 = dma.done.wait [#allocation3], 1024  }
  0x12   :  { %119 = vsyncadd [#allocation3], 4294966272  ;;  %v123_v0 = vmov 0   ;;  %v32_v1 = vld [vmem:[%s169_s1] sm:$0xff]  ;;  %v25_v3 = vld [vmem:[#allocation2 + $0x8] sm:$0xff]  ;;  %s124_s23 = smov [#allocation5]  }
  0x13   :  { %73 = vset.pattern.permute.xlu0 %v123_v0  ;;  %v24_v2 = vld [vmem:[#allocation2] sm:$0xff]  ;;  %v26_v4 = vld [vmem:[#allocation2 + $0x10] sm:$0xff]  ;;  %v27_v5 = vld [vmem:[#allocation2 + $0x18] sm:$0xff]  ;;  %s61_s24 = sshll.u32 %s124_s23, 4  ;;  %vm53_vm0 = vcmask 850944   ;;  %s62_s24 = int_to_ptr.vmem [resolvable:$true] %s61_s24 }
  0x14   :  { %35 = vperm.xlu0 %73, %v32_v1   ;;  %v28_v6 = vld [vmem:[#allocation2 + $0x20] sm:$0xff]  ;;  %v29_v7 = vld [vmem:[#allocation2 + $0x28] sm:$0xff]  ;;  %v30_v8 = vld [vmem:[#allocation2 + $0x30] sm:$0xff]  ;;  %s96_s0 = scalar_lea.vmem %s62_s24, 1024  ;;  %p101_p9 = scmp.lt.s32.totalorder %s62_s24, %s62_s24 }
  0x15   :  { %v31_v9 = vld [vmem:[#allocation2 + $0x38] sm:$0xff]  ;;  %p97_p8 = scmp.ne.s32.totalorder %s62_s24, %s96_s0  ;;  %p102_p10 = scmp.lt.s32.totalorder %s96_s0, %s96_s0 }
  0x17   :  { %p103_p11 = por %p102_p10, %p101_p9 }
  0x19   :  { %p104_p12 = pnand %p103_p11, %p97_p8 }
  0x93   :  { %v36_v10 = vpop.permute.xlu0 %35 }
  0x94   :  { %v38_v11 = vmul.f32 %v36_v10, %v24_v2  ;;  %v39_v12 = vmul.f32 %v36_v10, %v25_v3  ;;  %v40_v13 = vmul.f32 %v36_v10, %v26_v4  ;;  %v41_v14 = vmul.f32 %v36_v10, %v27_v5 }
  0x95   :  { %v42_v15 = vmul.f32 %v36_v10, %v28_v6  ;;  %v43_v16 = vmul.f32 %v36_v10, %v29_v7  ;;  %v44_v17 = vmul.f32 %v36_v10, %v30_v8  ;;  %v45_v18 = vmul.f32 %v36_v10, %v31_v9 }
  0x96   :  { %46 = vst [vmem:[#allocation5] sm:$0xff] %v38_v11  ;;  %47 = vst [vmem:[#allocation5 + $0x8] sm:$0xff] %v39_v12 }
  0x97   :  { %48 = vst [vmem:[#allocation5 + $0x10] sm:$0xff] %v40_v13  ;;  %49 = vst [vmem:[#allocation5 + $0x18] sm:$0xff] %v41_v14 }
  0x98   :  { %50 = vst [vmem:[#allocation5 + $0x20] sm:$0xff] %v42_v15  ;;  %51 = vst [vmem:[#allocation5 + $0x28] sm:$0xff] %v43_v16 }
  0x99   :  { %52 = vst [vmem:[#allocation5 + $0x30] sm:$0xff] %v44_v17  ;;  %54 = vst.msk [vmem:[#allocation5 + $0x38] sm:$0xff] %vm53_vm0, %v45_v18 }
  0x9a   :  { %107 = shalt.err (!%p104_p12)
}
  0x9b   :  { %s108_s26 = scalar_lea.hbm %s170_s2, 1024 }
  0x9c   :  { %p109_p13 = scmp.ne.s32.totalorder %s170_s2, %s108_s26  ;;  %p112_p0 = scmp.lt.u32.totalorder %s108_s26, %s170_s2 }
  0x9e   :  { %p114_p1 = pnand %p112_p0, %p109_p13 }
  0xa0   :  { %117 = shalt.err (!%p114_p1)
}
  0xa1   :  { %64 = dma.vmem_to_hbm [thread:$0]  %s62_s24, 1024, %s170_s2, [#allocation4]  }
  0xa2   :  { %120 = dma.done.wait [#allocation4], 1024  }
  0xa3   :  { %121 = vsyncadd [#allocation4], 4294966272 }
  0xa4   :  { %68 = vsyncpa [#allocation3], 1 }
  0xa5   :  { %69 = vsyncpa [#allocation4], 1 }

</bundles_post_ra>
